<compile_context>
chip_gen: v6e
topology: v6e:2x2x1
jax: 0.10.0
libtpu: 0.0.40
codegen_flags: <defaults>
</compile_context>

<pallas_src>
import functools

import jax
import jax.numpy as jnp
from jax.experimental import pallas as pl
from jax.experimental.pallas import tpu as pltpu

LANE = 128


def _round_up(x, m):
    return ((x + m - 1) // m) * m


def _vmem_capacity_bytes():
    """Physical VMEM of the attached TPU generation (conservative fallback)."""
    try:
        return int(pltpu.get_tpu_info().vmem_capacity_bytes)
    except Exception:
        return 64 * 1024 * 1024   # v7x-sized fallback: safe on every generation


def _plan(n):
    """Static padding / tiling / path plan, derived once from the node count."""
    cap = _vmem_capacity_bytes()
    vmem_limit = min(int(cap * 0.85), 112 * 1024 * 1024)   # ~54 MiB v7x, ~109 MiB v5e/v6e
    budget = int(cap * 0.80)

    # ---- fused path: whole Ahat resident in VMEM (single HBM pass) ----------
    n_pad = _round_up(max(n, 1), LANE)
    fused_bytes = (2 * n_pad * n_pad        # resident bf16 adj (single-buffered)
                   + 2 * n_pad * LANE       # resident bf16 features
                   + 2 * n_pad * LANE       # bf16 hidden-activation scratch
                   + 2 * 1024 * 1024)       # weights / bias / out / slack
    if fused_bytes <= budget // 2:
        tm = n_pad
        for cand in (512, 256, 128):        # row tiles pipeline the epilogue/output
            if n_pad > cand and n_pad % cand == 0:
                tm = cand
                break
        return dict(fused=True, n_pad=n_pad, tm=tm, tk=n_pad,
                    feat_resident=True, vmem_limit=vmem_limit)

    # ---- streaming path: adj streamed in large tiles, one call per layer ----
    n_pad = _round_up(n, 1024)
    tm = 1024
    # 8 MiB adj tiles where VMEM allows (v5e/v6e), 4 MiB on v7x's 64 MiB VMEM.
    tk_target = 4096 if budget >= 80 * 1024 * 1024 else 2048
    tk = 1024
    for cand in (tk_target, tk_target // 2, 1024):
        if n_pad % cand == 0:
            tk = cand
            break
    feat_resident = 2 * n_pad * LANE <= 8 * 1024 * 1024
    return dict(fused=False, n_pad=n_pad, tm=tm, tk=tk,
                feat_resident=feat_resident, vmem_limit=vmem_limit)


def _resident_spec(block_shape, index_map):
    """Constant-index operand: resident in VMEM, single-buffered (its block index
    never changes, so default double-buffering would only waste VMEM)."""
    try:
        return pl.BlockSpec(block_shape, index_map, pipeline_mode=pl.Buffered(1))
    except Exception:   # older jax without pipeline_mode / Buffered
        return pl.BlockSpec(block_shape, index_map)


def _masked_log_softmax(z, num_valid):
    """log_softmax over the first num_valid lanes; padded lanes output 0."""
    col = jax.lax.broadcasted_iota(jnp.int32, z.shape, 1)
    valid = col < num_valid
    zm = jnp.where(valid, z, -jnp.inf)
    m = jnp.max(zm, axis=1, keepdims=True)
    shifted = zm - m
    lse = jnp.log(jnp.sum(jnp.exp(shifted), axis=1, keepdims=True))
    return jnp.where(valid, shifted - lse, 0.0)


# -----------------------------------------------------------------------------
# Fused path: both layers in one pallas_call, adj resident in VMEM.
# -----------------------------------------------------------------------------
def fused_gcn_kernel(adj_ref, x_ref, w1_ref, b1_ref, w2_ref, b2_ref,
                     out_ref, h_ref, *, tm, num_classes):
    """grid = (phase, row tile).  phase 0: H = relu(Ahat X W1 + b1) -> VMEM
    scratch (bf16).  phase 1: out = log_softmax(Ahat H W2 + b2) for one row
    tile.  Both grid axes are sequential ("arbitrary") because phase 1 consumes
    every row of H; on v7x this trades one idle TensorCore for halving the
    dominant HBM stream (adj is DMA'd into VMEM exactly once)."""
    phase = pl.program_id(0)
    i = pl.program_id(1)
    row0 = pl.multiple_of(i * tm, tm)
    adj_rows = adj_ref[pl.ds(row0, tm), :]          # (tm, n_pad) bf16, VMEM slice

    @pl.when(phase == 0)
    def _():
        # Layer 1; dropout(training=False) is the identity.
        agg = jnp.dot(adj_rows, x_ref[...], preferred_element_type=jnp.float32)
        z = jnp.dot(agg.astype(jnp.bfloat16), w1_ref[...],
                    preferred_element_type=jnp.float32) + b1_ref[...]
        h_ref[pl.ds(row0, tm), :] = jnp.maximum(z, 0.0).astype(h_ref.dtype)

    @pl.when(phase == 1)
    def _():
        # Layer 2 + masked log_softmax over the real class lanes.
        agg = jnp.dot(adj_rows, h_ref[...], preferred_element_type=jnp.float32)
        z = jnp.dot(agg.astype(jnp.bfloat16), w2_ref[...],
                    preferred_element_type=jnp.float32) + b2_ref[...]
        out_ref[...] = _masked_log_softmax(z, num_classes).astype(out_ref.dtype)


def _fused_forward(adj_p, x_p, w1_p, b1_p, w2_p, b2_p, *, num_classes, tm,
                   vmem_limit):
    n_pad = adj_p.shape[0]
    f_pad = x_p.shape[1]
    h_pad = w1_p.shape[1]
    c_pad = w2_p.shape[1]
    r = n_pad // tm

    kernel = functools.partial(fused_gcn_kernel, tm=tm, num_classes=num_classes)

    flops = (2 * n_pad * n_pad * (f_pad + h_pad)
             + 2 * n_pad * (f_pad * h_pad + h_pad * c_pad))
    bytes_accessed = (2 * n_pad * n_pad + 2 * n_pad * f_pad
                      + 2 * (f_pad * h_pad + h_pad * c_pad)
                      + 4 * (h_pad + c_pad) + 4 * n_pad * c_pad)

    return pl.pallas_call(
        kernel,
        out_shape=jax.ShapeDtypeStruct((n_pad, c_pad), jnp.float32),
        grid_spec=pltpu.PrefetchScalarGridSpec(
            num_scalar_prefetch=0,
            grid=(2, r),
            in_specs=[
                _resident_spec((n_pad, n_pad), lambda p, i: (0, 0)),   # Ahat
                _resident_spec((n_pad, f_pad), lambda p, i: (0, 0)),   # X
                _resident_spec((f_pad, h_pad), lambda p, i: (0, 0)),   # W1
                _resident_spec((1, h_pad), lambda p, i: (0, 0)),       # b1
                _resident_spec((h_pad, c_pad), lambda p, i: (0, 0)),   # W2
                _resident_spec((1, c_pad), lambda p, i: (0, 0)),       # b2
            ],
            out_specs=pl.BlockSpec((tm, c_pad), lambda p, i: (i, 0)),
            scratch_shapes=[pltpu.VMEM((n_pad, h_pad), jnp.bfloat16)],  # H
        ),
        compiler_params=pltpu.CompilerParams(
            dimension_semantics=("arbitrary", "arbitrary"),
            vmem_limit_bytes=int(vmem_limit),
        ),
        cost_estimate=pl.CostEstimate(flops=int(flops),
                                      transcendentals=int(n_pad * c_pad),
                                      bytes_accessed=int(bytes_accessed)),
    )(adj_p, x_p, w1_p, b1_p, w2_p, b2_p)


# -----------------------------------------------------------------------------
# Streaming path: one pallas_call per layer, adj streamed in large tiles.
# -----------------------------------------------------------------------------
def streaming_gcn_layer_kernel(adj_ref, feat_ref, w_ref, b_ref, out_ref, acc_ref,
                               *, activation, num_valid, tk, feat_resident):
    """One GCN layer: act(Ahat @ feat @ W + b), Ahat streamed in (tm, tk) tiles.
    grid = (row tile i ["parallel"], reduction tile k ["arbitrary"]); acc_ref
    holds the f32 partial aggregation Ahat[i, :] @ feat."""
    k = pl.program_id(1)

    @pl.when(k == 0)
    def _():
        acc_ref[...] = jnp.zeros_like(acc_ref)

    if feat_resident:
        col0 = pl.multiple_of(k * tk, tk)
        feat_blk = feat_ref[pl.ds(col0, tk), :]       # slice the resident feats
    else:
        feat_blk = feat_ref[...]                      # streamed (tk, f_pad) block
    acc_ref[...] += jnp.dot(adj_ref[...], feat_blk,
                            preferred_element_type=jnp.float32)

    @pl.when(k == pl.num_programs(1) - 1)
    def _():
        # Epilogue: tiny bf16 feature-transform matmul + bias + activation.
        z = jnp.dot(acc_ref[...].astype(jnp.bfloat16), w_ref[...],
                    preferred_element_type=jnp.float32) + b_ref[...]
        if activation == "relu":
            out_ref[...] = jnp.maximum(z, 0.0).astype(out_ref.dtype)
        else:
            out_ref[...] = _masked_log_softmax(z, num_valid).astype(out_ref.dtype)


def _streaming_layer(adj_p, feat_p, w_p, b_p, *, activation, num_valid,
                     out_dtype, tm, tk, feat_resident, vmem_limit):
    n_pad = adj_p.shape[0]
    f_pad = feat_p.shape[1]
    c_pad = w_p.shape[1]
    grid = (n_pad // tm, n_pad // tk)

    kernel = functools.partial(streaming_gcn_layer_kernel, activation=activation,
                               num_valid=num_valid, tk=tk,
                               feat_resident=feat_resident)

    if feat_resident:
        feat_spec = _resident_spec((n_pad, f_pad), lambda i, k: (0, 0))
    else:
        # Stream feature rows in lockstep with adj's reduction (column) tiles.
        feat_spec = pl.BlockSpec((tk, f_pad), lambda i, k: (k, 0))

    flops = 2 * n_pad * n_pad * f_pad + 2 * n_pad * f_pad * c_pad
    transcendentals = n_pad * c_pad if activation == "log_softmax" else 0
    feat_reads = 1 if feat_resident else grid[0]
    bytes_accessed = (adj_p.size * adj_p.dtype.itemsize
                      + feat_reads * feat_p.size * feat_p.dtype.itemsize
                      + w_p.size * w_p.dtype.itemsize
                      + b_p.size * b_p.dtype.itemsize
                      + n_pad * c_pad * jnp.dtype(out_dtype).itemsize)

    return pl.pallas_call(
        kernel,
        out_shape=jax.ShapeDtypeStruct((n_pad, c_pad), out_dtype),
        grid_spec=pltpu.PrefetchScalarGridSpec(
            num_scalar_prefetch=0,
            grid=grid,
            in_specs=[
                pl.BlockSpec((tm, tk), lambda i, k: (i, k)),   # streamed Ahat tile
                feat_spec,
                _resident_spec((f_pad, c_pad), lambda i, k: (0, 0)),   # W
                _resident_spec((1, c_pad), lambda i, k: (0, 0)),       # b
            ],
            out_specs=pl.BlockSpec((tm, c_pad), lambda i, k: (i, 0)),
            scratch_shapes=[pltpu.VMEM((tm, f_pad), jnp.float32)],
        ),
        compiler_params=pltpu.CompilerParams(
            dimension_semantics=("parallel", "arbitrary"),
            vmem_limit_bytes=int(vmem_limit),
        ),
        cost_estimate=pl.CostEstimate(flops=int(flops),
                                      transcendentals=int(transcendentals),
                                      bytes_accessed=int(bytes_accessed)),
    )(adj_p, feat_p, w_p, b_p)


# -----------------------------------------------------------------------------
# Wrapper / graph preprocessing
# -----------------------------------------------------------------------------
def build_normalized_adjacency(edge_index, num_nodes):
    """Dense D^-1/2 (A + I) D^-1/2 from a (2, E) edge_index (src, dst).

    The diagonal is *set* (not added) to 1 so graphs whose edge_index already
    carries self-loops match PyG's gcn_norm (which only adds missing loops)."""
    src, dst = edge_index[0], edge_index[1]
    a = jnp.zeros((num_nodes, num_nodes), jnp.float32)
    a = a.at[dst, src].set(1.0)                        # message flow src -> dst
    idx = jnp.arange(num_nodes)
    a = a.at[idx, idx].set(1.0)                        # self-loops (idempotent)
    deg = jnp.sum(a, axis=1)
    d_inv_sqrt = jnp.where(deg > 0, 1.0 / jnp.sqrt(deg), 0.0)
    return a * d_inv_sqrt[:, None] * d_inv_sqrt[None, :]


def prepare_adjacency(adj):
    """Pad Ahat to the kernel grid and cast to bf16, ONCE per graph.

    Hoisted out of the jitted forward: doing this per call adds an extra f32
    read + bf16 write of the whole N^2 matrix to a bandwidth-bound kernel."""
    n = adj.shape[0]
    n_pad = _plan(n)["n_pad"]
    adj_p = jnp.zeros((n_pad, n_pad), jnp.bfloat16)
    return adj_p.at[:n, :n].set(adj.astype(jnp.bfloat16))


@jax.jit
def gcn_forward(adj_p, x, w1, b1, w2, b2):
    """relu(Ahat X W1 + b1) -> dropout(eval: identity) -> Ahat H W2 + b2 -> log_softmax.

    adj_p must be the pre-padded bf16 normalized adjacency from prepare_adjacency."""
    n, f = x.shape
    hidden = w1.shape[1]
    num_classes = w2.shape[1]
    plan = _plan(n)
    n_pad = plan["n_pad"]
    assert adj_p.shape == (n_pad, n_pad) and adj_p.dtype == jnp.bfloat16, (
        "adj_p must come from prepare_adjacency(adj)")

    f_pad = _round_up(f, LANE)
    h_pad = _round_up(hidden, LANE)
    c_pad = _round_up(num_classes, LANE)

    # Small operands: lane-dense zero padding; weights pre-cast to bf16 so the
    # feature-transform matmuls also run at bf16 MXU rate (f32 accumulation).
    x_p = jnp.zeros((n_pad, f_pad), jnp.bfloat16).at[:n, :f].set(
        x.astype(jnp.bfloat16))
    w1_p = jnp.zeros((f_pad, h_pad), jnp.bfloat16).at[:f, :hidden].set(
        w1.astype(jnp.bfloat16))
    b1_p = jnp.zeros((1, h_pad), jnp.float32).at[:, :hidden].set(
        b1.reshape(1, -1).astype(jnp.float32))
    w2_p = jnp.zeros((h_pad, c_pad), jnp.bfloat16).at[:hidden, :num_classes].set(
        w2.astype(jnp.bfloat16))
    b2_p = jnp.zeros((1, c_pad), jnp.float32).at[:, :num_classes].set(
        b2.reshape(1, -1).astype(jnp.float32))

    if plan["fused"]:
        out = _fused_forward(adj_p, x_p, w1_p, b1_p, w2_p, b2_p,
                             num_classes=num_classes, tm=plan["tm"],
                             vmem_limit=plan["vmem_limit"])
    else:
        h = _streaming_layer(adj_p, x_p, w1_p, b1_p, activation="relu",
                             num_valid=hidden, out_dtype=jnp.bfloat16,
                             tm=plan["tm"], tk=plan["tk"],
                             feat_resident=plan["feat_resident"],
                             vmem_limit=plan["vmem_limit"])
        # dropout(training=False) is the identity.
        out = _streaming_layer(adj_p, h, w2_p, b2_p, activation="log_softmax",
                               num_valid=num_classes, out_dtype=jnp.float32,
                               tm=plan["tm"], tk=plan["tk"],
                               feat_resident=plan["feat_resident"],
                               vmem_limit=plan["vmem_limit"])
    return out[:n, :num_classes]


if __name__ == "__main__":
    key = jax.random.PRNGKey(0)
    k_x, k_e, k_w1, k_w2 = jax.random.split(key, 4)

    num_nodes = 16
    num_features = 8
    hidden = 16
    num_classes = 4
    num_edges = 24

    # Deterministic synthetic graph (undirected: add both directions).
    src = jax.random.randint(k_e, (num_edges,), 0, num_nodes)
    dst = (src + 1 + jax.random.randint(jax.random.fold_in(k_e, 1),
                                        (num_edges,), 0, num_nodes - 1)) % num_nodes
    edge_index = jnp.stack(
        [jnp.concatenate([src, dst]), jnp.concatenate([dst, src])], axis=0)

    # Node features and GCNConv parameters (glorot-ish init, zero bias).
    x = jax.random.normal(k_x, (num_nodes, num_features), jnp.float32)
    w1 = jax.random.normal(k_w1, (num_features, hidden), jnp.float32) * (
        1.0 / jnp.sqrt(num_features))
    b1 = jnp.zeros((1, hidden), jnp.float32)
    w2 = jax.random.normal(k_w2, (hidden, num_classes), jnp.float32) * (
        1.0 / jnp.sqrt(hidden))
    b2 = jnp.zeros((1, num_classes), jnp.float32)

    adj = build_normalized_adjacency(edge_index, num_nodes)
    adj_p = prepare_adjacency(adj)     # hoisted: once per graph, not per forward

    out = gcn_forward(adj_p, x, w1, b1, w2, b2)
    out = jax.block_until_ready(out)

    # Reference 1: mirror the kernel's bf16 streams / bf16 weights / f32 accum.
    def bf(t):
        return t.astype(jnp.bfloat16).astype(jnp.float32)

    adj_b, x_b, w1_b, w2_b = bf(adj), bf(x), bf(w1), bf(w2)
    agg1 = adj_b @ x_b
    h_ref = jnp.maximum(bf(agg1) @ w1_b + b1, 0.0)
    agg2 = adj_b @ bf(h_ref)
    ref_b = jax.nn.log_softmax(bf(agg2) @ w2_b + b2, axis=1)

    # Reference 2: pure f32 math (bounds the intentional bf16-stream error).
    h32 = jnp.maximum(adj @ x @ w1 + b1, 0.0)
    ref32 = jax.nn.log_softmax(adj @ h32 @ w2 + b2, axis=1)

    assert out.shape == (num_nodes, num_classes)
    assert jnp.allclose(out, ref_b, atol=2e-2), "mismatch vs bf16-mirrored reference"
    assert jnp.allclose(out, ref32, atol=1e-1), "mismatch vs f32 reference"

    print("KERNEL_OK")
</pallas_src>

<mosaic_0001>
module attributes {stable_mosaic.version = 11 : i64} {
  func.func @fused_gcn_kernel(%arg0: i32, %arg1: i32, %arg2: memref<128x128xbf16, #tpu.memory_space<vmem>>, %arg3: memref<128x128xbf16, #tpu.memory_space<vmem>>, %arg4: memref<128x128xbf16, #tpu.memory_space<vmem>>, %arg5: memref<1x128xf32, #tpu.memory_space<vmem>>, %arg6: memref<128x128xbf16, #tpu.memory_space<vmem>>, %arg7: memref<1x128xf32, #tpu.memory_space<vmem>>, %arg8: memref<128x128xf32, #tpu.memory_space<vmem>>, %arg9: memref<128x128xbf16, #tpu.memory_space<vmem>>) attributes {dimension_semantics = [#tpu.dimension_semantics<arbitrary>, #tpu.dimension_semantics<arbitrary>], iteration_bounds = array<i64: 2, 1>, scalar_prefetch = 0 : i64, scratch_operands = 1 : i64, tpu.core_type = #tpu.core_type<tc>, window_params = [{pipeline_mode = #tpu.pipeline_mode<synchronous>, transform_indices = @transform_0, window_bounds = array<i64: 128, 128>}, {pipeline_mode = #tpu.pipeline_mode<synchronous>, transform_indices = @transform_1, window_bounds = array<i64: 128, 128>}, {pipeline_mode = #tpu.pipeline_mode<synchronous>, transform_indices = @transform_2, window_bounds = array<i64: 128, 128>}, {pipeline_mode = #tpu.pipeline_mode<synchronous>, transform_indices = @transform_3, window_bounds = array<i64: 1, 128>}, {pipeline_mode = #tpu.pipeline_mode<synchronous>, transform_indices = @transform_4, window_bounds = array<i64: 128, 128>}, {pipeline_mode = #tpu.pipeline_mode<synchronous>, transform_indices = @transform_5, window_bounds = array<i64: 1, 128>}, {transform_indices = @transform_6, window_bounds = array<i64: 128, 128>}]} {
    %c128_i32 = arith.constant 128 : i32
    %0 = arith.muli %arg1, %c128_i32 : i32
    %1 = tpu.assume_multiple %0, 128 : i32
    %2 = arith.index_cast %1 : i32 to index
    %c0 = arith.constant 0 : index
    %3 = vector.load %arg2[%2, %c0] : memref<128x128xbf16, #tpu.memory_space<vmem>>, vector<128x128xbf16>
    %c0_i32 = arith.constant 0 : i32
    %4 = arith.cmpi eq, %arg0, %c0_i32 : i32
    %5 = arith.extui %4 : i1 to i32
    %c0_i32_0 = arith.constant 0 : i32
    %6 = arith.cmpi ne, %5, %c0_i32_0 : i32
    scf.if %6 {
      %c0_2 = arith.constant 0 : index
      %c0_3 = arith.constant 0 : index
      %10 = vector.load %arg3[%c0_2, %c0_3] : memref<128x128xbf16, #tpu.memory_space<vmem>>, vector<128x128xbf16>
      %cst = arith.constant dense<0.000000e+00> : vector<128x128xf32>
      %11 = tpu.matmul %3, %10, %cst {dimension_numbers = #tpu.dot_dimension_numbers<[1], [0], [0], [1], [0, 0, 1, 1], [], []>} : vector<128x128xbf16>, vector<128x128xbf16>, vector<128x128xf32> -> vector<128x128xf32>
      %12 = arith.truncf %11 : vector<128x128xf32> to vector<128x128xbf16>
      %c0_4 = arith.constant 0 : index
      %c0_5 = arith.constant 0 : index
      %13 = vector.load %arg4[%c0_4, %c0_5] : memref<128x128xbf16, #tpu.memory_space<vmem>>, vector<128x128xbf16>
      %cst_6 = arith.constant dense<0.000000e+00> : vector<128x128xf32>
      %14 = tpu.matmul %12, %13, %cst_6 {dimension_numbers = #tpu.dot_dimension_numbers<[1], [0], [0], [1], [0, 0, 1, 1], [], []>} : vector<128x128xbf16>, vector<128x128xbf16>, vector<128x128xf32> -> vector<128x128xf32>
      %c0_7 = arith.constant 0 : index
      %c0_8 = arith.constant 0 : index
      %15 = vector.load %arg5[%c0_7, %c0_8] : memref<1x128xf32, #tpu.memory_space<vmem>>, vector<1x128xf32>
      %16 = vector.broadcast %15 : vector<1x128xf32> to vector<128x128xf32>
      %17 = arith.addf %14, %16 : vector<128x128xf32>
      %cst_9 = arith.constant 0.000000e+00 : f32
      %18 = vector.broadcast %cst_9 : f32 to vector<128x128xf32>
      %19 = arith.maximumf %17, %18 : vector<128x128xf32>
      %20 = arith.truncf %19 : vector<128x128xf32> to vector<128x128xbf16>
      %21 = arith.index_cast %1 : i32 to index
      %c0_10 = arith.constant 0 : index
      %22 = vector.load %arg9[%21, %c0_10] : memref<128x128xbf16, #tpu.memory_space<vmem>>, vector<128x128xbf16>
      tpu.vector_store %arg9[%21, %c0_10], %20 {strides = array<i32>} : memref<128x128xbf16, #tpu.memory_space<vmem>>, vector<128x128xbf16>,
    } else {
    }
    %c1_i32 = arith.constant 1 : i32
    %7 = arith.cmpi eq, %arg0, %c1_i32 : i32
    %8 = arith.extui %7 : i1 to i32
    %c0_i32_1 = arith.constant 0 : i32
    %9 = arith.cmpi ne, %8, %c0_i32_1 : i32
    scf.if %9 {
      %c0_2 = arith.constant 0 : index
      %c0_3 = arith.constant 0 : index
      %10 = vector.load %arg9[%c0_2, %c0_3] : memref<128x128xbf16, #tpu.memory_space<vmem>>, vector<128x128xbf16>
      %cst = arith.constant dense<0.000000e+00> : vector<128x128xf32>
      %11 = tpu.matmul %3, %10, %cst {dimension_numbers = #tpu.dot_dimension_numbers<[1], [0], [0], [1], [0, 0, 1, 1], [], []>} : vector<128x128xbf16>, vector<128x128xbf16>, vector<128x128xf32> -> vector<128x128xf32>
      %12 = arith.truncf %11 : vector<128x128xf32> to vector<128x128xbf16>
      %c0_4 = arith.constant 0 : index
      %c0_5 = arith.constant 0 : index
      %13 = vector.load %arg6[%c0_4, %c0_5] : memref<128x128xbf16, #tpu.memory_space<vmem>>, vector<128x128xbf16>
      %cst_6 = arith.constant dense<0.000000e+00> : vector<128x128xf32>
      %14 = tpu.matmul %12, %13, %cst_6 {dimension_numbers = #tpu.dot_dimension_numbers<[1], [0], [0], [1], [0, 0, 1, 1], [], []>} : vector<128x128xbf16>, vector<128x128xbf16>, vector<128x128xf32> -> vector<128x128xf32>
      %c0_7 = arith.constant 0 : index
      %c0_8 = arith.constant 0 : index
      %15 = vector.load %arg7[%c0_7, %c0_8] : memref<1x128xf32, #tpu.memory_space<vmem>>, vector<1x128xf32>
      %16 = vector.broadcast %15 : vector<1x128xf32> to vector<128x128xf32>
      %17 = arith.addf %14, %16 : vector<128x128xf32>
      %18 = tpu.iota {dimensions = array<i32: 1>} : vector<128x128xi32>
      %c4_i32 = arith.constant 4 : i32
      %19 = vector.broadcast %c4_i32 : i32 to vector<128x128xi32>
      %20 = arith.cmpi slt, %18, %19 : vector<128x128xi32>
      %cst_9 = arith.constant 0xFF800000 : f32
      %21 = vector.broadcast %cst_9 : f32 to vector<128x128xf32>
      %22 = arith.select %20, %17, %21 : vector<128x128xi1>, vector<128x128xf32>
      %cst_10 = arith.constant dense<0xFF800000> : vector<128xf32>
      %23 = vector.multi_reduction <maximumf>, %22, %cst_10 [1] : vector<128x128xf32> to vector<128xf32>
      %24 = vector.shape_cast %23 : vector<128xf32> to vector<128x1xf32>
      %25 = vector.broadcast %24 : vector<128x1xf32> to vector<128x128xf32>
      %26 = arith.subf %22, %25 : vector<128x128xf32>
      %27 = math.exp %26 : vector<128x128xf32>
      %cst_11 = arith.constant dense<0.000000e+00> : vector<128xf32>
      %28 = vector.multi_reduction <add>, %27, %cst_11 [1] : vector<128x128xf32> to vector<128xf32>
      %29 = vector.shape_cast %28 : vector<128xf32> to vector<128x1xf32>
      %30 = math.log %29 : vector<128x1xf32>
      %31 = vector.broadcast %30 : vector<128x1xf32> to vector<128x128xf32>
      %32 = arith.subf %26, %31 : vector<128x128xf32>
      %cst_12 = arith.constant 0.000000e+00 : f32
      %33 = vector.broadcast %cst_12 : f32 to vector<128x128xf32>
      %34 = arith.select %20, %32, %33 : vector<128x128xi1>, vector<128x128xf32>
      %c0_13 = arith.constant 0 : index
      %c0_14 = arith.constant 0 : index
      %35 = vector.load %arg8[%c0_13, %c0_14] : memref<128x128xf32, #tpu.memory_space<vmem>>, vector<128x128xf32>
      tpu.vector_store %arg8[%c0_13, %c0_14], %34 {strides = array<i32>} : memref<128x128xf32, #tpu.memory_space<vmem>>, vector<128x128xf32>,
    } else {
    }
    return
  }
  func.func @transform_0(%arg0: i32, %arg1: i32) -> (i32, i32) {
    %c0_i32 = arith.constant 0 : i32
    %c0_i32_0 = arith.constant 0 : i32
    %c0_i32_1 = arith.constant 0 : i32
    return %c0_i32, %c0_i32_0 : i32, i32
  }
  func.func @transform_1(%arg0: i32, %arg1: i32) -> (i32, i32) {
    %c0_i32 = arith.constant 0 : i32
    %c0_i32_0 = arith.constant 0 : i32
    %c0_i32_1 = arith.constant 0 : i32
    return %c0_i32, %c0_i32_0 : i32, i32
  }
  func.func @transform_2(%arg0: i32, %arg1: i32) -> (i32, i32) {
    %c0_i32 = arith.constant 0 : i32
    %c0_i32_0 = arith.constant 0 : i32
    %c0_i32_1 = arith.constant 0 : i32
    return %c0_i32, %c0_i32_0 : i32, i32
  }
  func.func @transform_3(%arg0: i32, %arg1: i32) -> (i32, i32) {
    %c0_i32 = arith.constant 0 : i32
    %c0_i32_0 = arith.constant 0 : i32
    %c0_i32_1 = arith.constant 0 : i32
    return %c0_i32, %c0_i32_0 : i32, i32
  }
  func.func @transform_4(%arg0: i32, %arg1: i32) -> (i32, i32) {
    %c0_i32 = arith.constant 0 : i32
    %c0_i32_0 = arith.constant 0 : i32
    %c0_i32_1 = arith.constant 0 : i32
    return %c0_i32, %c0_i32_0 : i32, i32
  }
  func.func @transform_5(%arg0: i32, %arg1: i32) -> (i32, i32) {
    %c0_i32 = arith.constant 0 : i32
    %c0_i32_0 = arith.constant 0 : i32
    %c0_i32_1 = arith.constant 0 : i32
    return %c0_i32, %c0_i32_0 : i32, i32
  }
  func.func @transform_6(%arg0: i32, %arg1: i32) -> (i32, i32) {
    %c0_i32 = arith.constant 0 : i32
    %c0_i32_0 = arith.constant 0 : i32
    return %arg1, %c0_i32 : i32, i32
  }
}

</mosaic_0001>

<bundles_post_ra>
// kernel: gcn_forward.1
= control target key start
LH: loop header
LB: loop body
LE: loop exit
PB: predicated region body
PF: predicated region fallthrough
CT: control target
= control target key end

     0   :  { %s1917_s21 = smov 0   ;;  %s1919_s22 = smov 0   ;;  %s2341_s0 = inlined_call_operand.vmem [shape: bf16[128,128], index: 0, kind: input, shape index: {}]   ;;  %s2342_s1 = inlined_call_operand.vmem [shape: bf16[128,128], index: 1, kind: input, shape index: {}]   ;;  %s2343_s2 = inlined_call_operand.vmem [shape: bf16[128,128], index: 2, kind: input, shape index: {}]   ;;  %s2344_s3 = inlined_call_operand.vmem [shape: f32[1,128], index: 3, kind: input, shape index: {}]   ;;  %s2345_s4 = inlined_call_operand.vmem [shape: bf16[128,128], index: 4, kind: input, shape index: {}]   ;;  %s2346_s5 = inlined_call_operand.vmem [shape: f32[1,128], index: 5, kind: input, shape index: {}]   ;;  %s2347_s6 = inlined_call_operand.vmem [shape: f32[128,128], index: 6, kind: output, shape index: {}]  }
   0x1   :  { %s1921_s23 = smov 0  }
   0x2 LB: > { %s28_s24 = sadd.s32 1, %s1876_s22  ;;  %p1410_p0 = scmp.ge.s32.totalorder %s1880_s23, 1  ;;  %s1880_s23 = sphi %s1921_s23, %s16_s23   ;;  %s1876_s22 = sphi %s1919_s22, %s2349_s22   ;;  %s1872_s21 = sphi %s1917_s21, %s2348_s21  }
   0x3   : > { %p30_p1 = scmp.ge.s32.totalorder %s28_s24, 2  ;;  %p214_p2 = scmp.lt.s32.totalorder %s1880_s23, 3 }
   0x5   : > { %s2351_s24 = smov (%p30_p1, %s28_s24), 0  ;;  %p215_p3 = pnand %p1410_p0, %p214_p2 }
   0x6   : > { %p1411_p4 = scmp.ne.s32.totalorder (!%p215_p3), %s1872_s21, 0 }
   0x7   : > { %218 = sbr.rel (%p215_p3) target bundleno = 1273 (0x4f9), region = 44 }
   0xc   : > { %v1940_v0 = vld [vmem:[%s2341_s0] sm:$0xf]  ;;  %v1945_v1 = vld [vmem:[%s2341_s0 + $0x4] sm:$0xf]  ;;  %v1950_v2 = vld [vmem:[%s2341_s0 + $0x8] sm:$0xf] }
   0xd   : > { %v1955_v3 = vld [vmem:[%s2341_s0 + $0xc] sm:$0xf]  ;;  %v1960_v4 = vld [vmem:[%s2341_s0 + $0x10] sm:$0xf]  ;;  %v1965_v5 = vld [vmem:[%s2341_s0 + $0x14] sm:$0xf] }
   0xe   : > { %v1970_v6 = vld [vmem:[%s2341_s0 + $0x18] sm:$0xf]  ;;  %v1975_v7 = vld [vmem:[%s2341_s0 + $0x1c] sm:$0xf]  ;;  %v1980_v8 = vld [vmem:[%s2341_s0 + $0x20] sm:$0xf] }
   0xf   : > { %v1985_v9 = vld [vmem:[%s2341_s0 + $0x24] sm:$0xf]  ;;  %v1990_v10 = vld [vmem:[%s2341_s0 + $0x28] sm:$0xf]  ;;  %v1995_v11 = vld [vmem:[%s2341_s0 + $0x2c] sm:$0xf] }
  0x10   : > { %v2000_v12 = vld [vmem:[%s2341_s0 + $0x30] sm:$0xf]  ;;  %v2005_v13 = vld [vmem:[%s2341_s0 + $0x34] sm:$0xf]  ;;  %v2010_v14 = vld [vmem:[%s2341_s0 + $0x38] sm:$0xf] }
  0x11   : > { %v2015_v15 = vld [vmem:[%s2341_s0 + $0x3c] sm:$0xf]  ;;  %270 = sbr.rel (%p1411_p4) target bundleno = 487 (0x1e7), region = 48 }
  0x16   : > { %v1762_v16 = vld [vmem:[%s2342_s1 + $0x38] sm:$0xff]   ;;  %v1412_v17 = vcombine.low %v1940_v0, %v1945_v1  ;;  %v1763_v18 = vld [vmem:[%s2342_s1 + $0x30] sm:$0xff]   ;;  %v1764_v19 = vld [vmem:[%s2342_s1 + $0x28] sm:$0xff]   ;;  %v1413_v31 = vcombine.low %v1950_v2, %v1955_v3  ;;  %v1414_v32 = vcombine.low %v1960_v4, %v1965_v5  ;;  %v1415_v33 = vcombine.low %v1970_v6, %v1975_v7 }
  0x17   : > { %1610 = vmatprep.subr.bf16.mxu0 %v1762_v16  ;;  %v1765_v20 = vld [vmem:[%s2342_s1 + $0x20] sm:$0xff]   ;;  %v1770_v21 = vld [vmem:[%s2343_s2 + $0x38] sm:$0xff]   ;;  %v1771_v22 = vld [vmem:[%s2343_s2 + $0x30] sm:$0xff]   ;;  %v1416_v34 = vcombine.low %v1980_v8, %v1985_v9  ;;  %v1417_v35 = vcombine.low %v1990_v10, %v1995_v11  ;;  %v1418_v36 = vcombine.low %v2000_v12, %v2005_v13  ;;  %v1419_v37 = vcombine.low %v2010_v14, %v2015_v15 }
  0x18   : > { %1626 = vmatprep.mubr.bf16.mxu0 %v1412_v17  ;;  %1611 = vmatpush3.bf16.msra.mxu0 %v1762_v16  ;;  %v1766_v23 = vld [vmem:[%s2342_s1 + $0x18] sm:$0xff]   ;;  %v1772_v24 = vld [vmem:[%s2343_s2 + $0x28] sm:$0xff]   ;;  %v1767_v25 = vld [vmem:[%s2342_s1 + $0x10] sm:$0xff]  }
  0x19   : > { %1612 = vmatprep.subr.bf16.mxu0 %v1763_v18  ;;  %1642 = vmatprep.subr.bf16.mxu1 %v1770_v21  ;;  %v1773_v26 = vld [vmem:[%s2343_s2 + $0x20] sm:$0xff]   ;;  %v1768_v27 = vld [vmem:[%s2342_s1 + $0x8] sm:$0xff]   ;;  %v1774_v28 = vld [vmem:[%s2343_s2 + $0x18] sm:$0xff]  }
  0x1a   : > { %1643 = vmatpush3.bf16.msra.mxu1 %v1770_v21  ;;  %v1769_v29 = vld [vmem:[%s2342_s1] sm:$0xff]   ;;  %v1775_v30 = vld [vmem:[%s2343_s2 + $0x10] sm:$0xff]   ;;  %v1776_v38 = vld [vmem:[%s2343_s2 + $0x8] sm:$0xff]  }
  0x1b   : > { %1644 = vmatprep.subr.bf16.mxu1 %v1771_v22  ;;  %v1777_v39 = vld [vmem:[%s2343_s2] sm:$0xff]  }
  0x1c   : > { %1613 = vmatpush3.bf16.msra.mxu0 %v1763_v18  ;;  %v1428_v17 = vld [vmem:[%s2344_s3] ss:$0 sm:$0xff] }
  0x1d   : > { %1614 = vmatprep.subr.bf16.mxu0 %v1764_v19 }
  0x1e   : > { %1645 = vmatpush3.bf16.msra.mxu1 %v1771_v22 }
  0x1f   : > { %1646 = vmatprep.subr.bf16.mxu1 %v1772_v24 }
  0x20   : > { %1615 = vmatpush3.bf16.msra.mxu0 %v1764_v19 }
  0x21   : > { %1616 = vmatprep.subr.bf16.mxu0 %v1765_v20 }
  0x22   : > { %1647 = vmatpush3.bf16.msra.mxu1 %v1772_v24 }
  0x23   : > { %1648 = vmatprep.subr.bf16.mxu1 %v1773_v26 }
  0x24   : > { %1617 = vmatpush3.bf16.msra.mxu0 %v1765_v20 }
  0x25   : > { %1618 = vmatprep.subr.bf16.mxu0 %v1766_v23 }
  0x26   : > { %1649 = vmatpush3.bf16.msra.mxu1 %v1773_v26 }
  0x27   : > { %1650 = vmatprep.subr.bf16.mxu1 %v1774_v28 }
  0x28   : > { %1619 = vmatpush3.bf16.msra.mxu0 %v1766_v23 }
  0x29   : > { %1620 = vmatprep.subr.bf16.mxu0 %v1767_v25 }
  0x2a   : > { %1651 = vmatpush3.bf16.msra.mxu1 %v1774_v28 }
  0x2b   : > { %1652 = vmatprep.subr.bf16.mxu1 %v1775_v30 }
  0x2c   : > { %1621 = vmatpush3.bf16.msra.mxu0 %v1767_v25 }
  0x2d   : > { %1622 = vmatprep.subr.bf16.mxu0 %v1768_v27 }
  0x2e   : > { %1653 = vmatpush3.bf16.msra.mxu1 %v1775_v30 }
  0x2f   : > { %1654 = vmatprep.subr.bf16.mxu1 %v1776_v38 }
  0x30   : > { %1623 = vmatpush3.bf16.msra.mxu0 %v1768_v27 }
  0x31   : > { %1624 = vmatprep.subr.bf16.mxu0 %v1769_v29 }
  0x32   : > { %1655 = vmatpush3.bf16.msra.mxu1 %v1776_v38 }
  0x33   : > { %1656 = vmatprep.subr.bf16.mxu1 %v1777_v39 }
  0x34   : > { %1625 = vmatpush3.bf16.msra.mxu0 %v1769_v29 }
  0x36   : > { %1657 = vmatpush3.bf16.msra.mxu1 %v1777_v39 }
  0x37   : > { %1627 = vmatmul.mubr.bf16.vlgmr.msra.gmra.mxu0 %v1413_v31 }
  0x38   : > { %1630 = vmatprep.mubr.bf16.mxu0 %v1414_v32 }
  0x3f   : > { %1631 = vmatmul.mubr.bf16.gmra.mxu0 %v1415_v33 }
  0x40   : > { %1634 = vmatprep.mubr.bf16.mxu0 %v1416_v34 }
  0x47   : > { %1635 = vmatmul.mubr.bf16.gmra.mxu0 %v1417_v35 }
  0x48   : > { %1638 = vmatprep.mubr.bf16.mxu0 %v1418_v36 }
  0x4f   : > { %1639 = vmatmul.mubr.bf16.gmra.mxu0 %v1419_v37 }
  0xf7   : > { %v1628_v40 = vpop.f32.mrf.mxu0 }
  0xf9   : > { %v417_v41 = vpop.f32.mrf.mxu0 }
  0xfb   : > { %v1629_v42 = vpop.f32.mrf.mxu0 }
  0xfc   : > { %v481_v45 = vpack.c.bf16 %v1629_v42, %v1628_v40 }
  0xfd   : > { %v420_v43 = vpop.f32.mrf.mxu0 }
  0xfe   : > { %v480_v44 = vpack.c.bf16 %v420_v43, %v417_v41 }
  0xff   : > { %v1632_v46 = vpop.f32.mrf.mxu0 }
 0x100   : > { %1658 = vmatprep.mubr.bf16.mxu1 %v480_v44 }
 0x101   : > { %v433_v47 = vpop.f32.mrf.mxu0  ;;  %1659 = vmatmul.mubr.bf16.vlgmr.msra.gmra.mxu1 %v481_v45 }
 0x103   : > { %v1633_v48 = vpop.f32.mrf.mxu0 }
 0x104   : > { %v483_v51 = vpack.c.bf16 %v1633_v48, %v1632_v46 }
 0x105   : > { %v436_v49 = vpop.f32.mrf.mxu0 }
 0x106   : > { %v482_v50 = vpack.c.bf16 %v436_v49, %v433_v47 }
 0x107   : > { %v1636_v52 = vpop.f32.mrf.mxu0 }
 0x108   : > { %1662 = vmatprep.mubr.bf16.mxu1 %v482_v50 }
 0x109   : > { %v449_v53 = vpop.f32.mrf.mxu0  ;;  %1663 = vmatmul.mubr.bf16.gmra.mxu1 %v483_v51 }
 0x10b   : > { %v1637_v54 = vpop.f32.mrf.mxu0 }
 0x10c   : > { %v485_v57 = vpack.c.bf16 %v1637_v54, %v1636_v52 }
 0x10d   : > { %v452_v55 = vpop.f32.mrf.mxu0 }
 0x10e   : > { %v484_v56 = vpack.c.bf16 %v452_v55, %v449_v53 }
 0x10f   : > { %v1640_v58 = vpop.f32.mrf.mxu0 }
 0x110   : > { %1666 = vmatprep.mubr.bf16.mxu1 %v484_v56 }
 0x111   : > { %v465_v59 = vpop.f32.mrf.mxu0  ;;  %1667 = vmatmul.mubr.bf16.gmra.mxu1 %v485_v57 }
 0x113   : > { %v1641_v60 = vpop.f32.mrf.mxu0 }
 0x114   : > { %v487_v63 = vpack.c.bf16 %v1641_v60, %v1640_v58 }
 0x115   : > { %v468_v61 = vpop.f32.mrf.mxu0 }
 0x116   : > { %v486_v62 = vpack.c.bf16 %v468_v61, %v465_v59 }
 0x118   : > { %1670 = vmatprep.mubr.bf16.mxu1 %v486_v62 }
 0x119   : > { %1671 = vmatmul.mubr.bf16.gmra.mxu1 %v487_v63 }
 0x1c1   : > { %v1660_v16 = vpop.f32.mrf.mxu1 }
 0x1c2   : > { %v602_v19 = vadd.f32 %v1660_v16, %v1428_v17 }
 0x1c3   : > { %v593_v18 = vpop.f32.mrf.mxu1 }
 0x1c4   : > { %v594_v21 = vadd.f32 %v1428_v17, %v593_v18  ;;  %v658_v24 = vmax.f32 %v602_v19, 0.0 }
 0x1c5   : > { %v1661_v20 = vpop.f32.mrf.mxu1 }
 0x1c6   : > { %v605_v22 = vadd.f32 %v1661_v20, %v1428_v17  ;;  %v656_v28 = vmax.f32 %v594_v21, 0.0 }
 0x1c7   : > { %v596_v23 = vpop.f32.mrf.mxu1 }
 0x1c8   : > { %v659_v25 = vmax.f32 %v605_v22, 0.0  ;;  %v597_v26 = vadd.f32 %v1428_v17, %v596_v23 }
 0x1c9   : > { %v1664_v27 = vpop.f32.mrf.mxu1 }
 0x1ca   : > { %v1507_v29 = vpack.c.bf16 %v659_v25, %v658_v24  ;;  %v657_v30 = vmax.f32 %v597_v26, 0.0  ;;  %v618_v33 = vadd.f32 %v1664_v27, %v1428_v17 }
 0x1cb   : > { %v609_v31 = vpop.f32.mrf.mxu1 }
 0x1cc   : > { %1539 = vst [vmem:[#allocation2 + $0x8] sm:$0xff] %v1507_v29   ;;  %v1502_v32 = vpack.c.bf16 %v657_v30, %v656_v28  ;;  %v610_v35 = vadd.f32 %v1428_v17, %v609_v31  ;;  %v662_v38 = vmax.f32 %v618_v33, 0.0 }
 0x1cd   : > { %v1665_v34 = vpop.f32.mrf.mxu1 }
 0x1ce   : > { %1503 = vst [vmem:[#allocation2] sm:$0xff] %v1502_v32   ;;  %v621_v36 = vadd.f32 %v1665_v34, %v1428_v17  ;;  %v660_v42 = vmax.f32 %v610_v35, 0.0 }
 0x1cf   : > { %v612_v37 = vpop.f32.mrf.mxu1 }
 0x1d0   : > { %v663_v39 = vmax.f32 %v621_v36, 0.0  ;;  %v613_v40 = vadd.f32 %v1428_v17, %v612_v37 }
 0x1d1   : > { %v1668_v41 = vpop.f32.mrf.mxu1 }
 0x1d2   : > { %v1517_v43 = vpack.c.bf16 %v663_v39, %v662_v38  ;;  %v661_v44 = vmax.f32 %v613_v40, 0.0  ;;  %v634_v47 = vadd.f32 %v1668_v41, %v1428_v17 }
 0x1d3   : > { %v625_v45 = vpop.f32.mrf.mxu1 }
 0x1d4   : > { %1541 = vst [vmem:[#allocation2 + $0x18] sm:$0xff] %v1517_v43   ;;  %v1512_v46 = vpack.c.bf16 %v661_v44, %v660_v42  ;;  %v626_v49 = vadd.f32 %v1428_v17, %v625_v45  ;;  %v666_v52 = vmax.f32 %v634_v47, 0.0 }
 0x1d5   : > { %v1669_v48 = vpop.f32.mrf.mxu1 }
 0x1d6   : > { %1540 = vst [vmem:[#allocation2 + $0x10] sm:$0xff] %v1512_v46   ;;  %v637_v50 = vadd.f32 %v1669_v48, %v1428_v17  ;;  %v664_v56 = vmax.f32 %v626_v49, 0.0 }
 0x1d7   : > { %v628_v51 = vpop.f32.mrf.mxu1 }
 0x1d8   : > { %v667_v53 = vmax.f32 %v637_v50, 0.0  ;;  %v629_v54 = vadd.f32 %v1428_v17, %v628_v51 }
 0x1d9   : > { %v1672_v55 = vpop.f32.mrf.mxu1 }
 0x1da   : > { %v1527_v57 = vpack.c.bf16 %v667_v53, %v666_v52  ;;  %v665_v58 = vmax.f32 %v629_v54, 0.0  ;;  %v650_v61 = vadd.f32 %v1672_v55, %v1428_v17 }
 0x1db   : > { %v641_v59 = vpop.f32.mrf.mxu1 }
 0x1dc   : > { %1543 = vst [vmem:[#allocation2 + $0x28] sm:$0xff] %v1527_v57   ;;  %v1522_v60 = vpack.c.bf16 %v665_v58, %v664_v56  ;;  %v642_v63 = vadd.f32 %v1428_v17, %v641_v59  ;;  %v670_v19 = vmax.f32 %v650_v61, 0.0 }
 0x1dd   : > { %v1673_v62 = vpop.f32.mrf.mxu1 }
 0x1de   : > { %1542 = vst [vmem:[#allocation2 + $0x20] sm:$0xff] %v1522_v60   ;;  %v653_v16 = vadd.f32 %v1673_v62, %v1428_v17  ;;  %v668_v22 = vmax.f32 %v642_v63, 0.0 }
 0x1df   : > { %v644_v18 = vpop.f32.mrf.mxu1 }
 0x1e0   : > { %v671_v20 = vmax.f32 %v653_v16, 0.0  ;;  %v645_v21 = vadd.f32 %v1428_v17, %v644_v18 }
 0x1e2   : > { %v1537_v23 = vpack.c.bf16 %v671_v20, %v670_v19  ;;  %v669_v24 = vmax.f32 %v645_v21, 0.0 }
 0x1e4   : > { %1545 = vst [vmem:[#allocation2 + $0x38] sm:$0xff] %v1537_v23   ;;  %v1532_v25 = vpack.c.bf16 %v669_v24, %v668_v22 }
 0x1e6   : > { %1544 = vst [vmem:[#allocation2 + $0x30] sm:$0xff] %v1532_v25  }
 0x1e7 PF: > { %p1453_p5 = scmp.ne.s32.totalorder %s1872_s21, 1 }
 0x1e9   : > { %757 = sbr.rel (%p1453_p5) target bundleno = 1273 (0x4f9), region = 52 }
 0x1ee   : > { %v1778_v26 = vld [vmem:[#allocation2 + $0x38] sm:$0xff]   ;;  %v1454_v27 = vcombine.low %v1940_v0, %v1945_v1  ;;  %v1779_v28 = vld [vmem:[#allocation2 + $0x30] sm:$0xff]   ;;  %v1780_v17 = vld [vmem:[#allocation2 + $0x28] sm:$0xff]   ;;  %v1455_v38 = vcombine.low %v1950_v2, %v1955_v3  ;;  %v1456_v39 = vcombine.low %v1960_v4, %v1965_v5  ;;  %v1457_v40 = vcombine.low %v1970_v6, %v1975_v7 }
 0x1ef   : > { %1674 = vmatprep.subr.bf16.mxu0 %v1778_v26  ;;  %v1781_v29 = vld [vmem:[#allocation2 + $0x20] sm:$0xff]   ;;  %v1786_v30 = vld [vmem:[%s2345_s4 + $0x38] sm:$0xff]   ;;  %v1787_v31 = vld [vmem:[%s2345_s4 + $0x30] sm:$0xff]   ;;  %v1458_v41 = vcombine.low %v1980_v8, %v1985_v9  ;;  %v1459_v42 = vcombine.low %v1990_v10, %v1995_v11  ;;  %v1460_v2 = vcombine.low %v2000_v12, %v2005_v13  ;;  %v1461_v3 = vcombine.low %v2010_v14, %v2015_v15 }
 0x1f0   : > { %1690 = vmatprep.mubr.bf16.mxu0 %v1454_v27  ;;  %1675 = vmatpush3.bf16.msra.mxu0 %v1778_v26  ;;  %v1782_v0 = vld [vmem:[#allocation2 + $0x18] sm:$0xff]   ;;  %v1788_v1 = vld [vmem:[%s2345_s4 + $0x28] sm:$0xff]   ;;  %v1783_v32 = vld [vmem:[#allocation2 + $0x10] sm:$0xff]   ;;  %v1143_v57 = vlaneseq }
 0x1f1   : > { %1676 = vmatprep.subr.bf16.mxu0 %v1779_v28  ;;  %1706 = vmatprep.subr.bf16.mxu1 %v1786_v30  ;;  %v1789_v33 = vld [vmem:[%s2345_s4 + $0x20] sm:$0xff]   ;;  %v1784_v34 = vld [vmem:[#allocation2 + $0x8] sm:$0xff]   ;;  %v1790_v35 = vld [vmem:[%s2345_s4 + $0x18] sm:$0xff]  }
 0x1f2   : > { %1707 = vmatpush3.bf16.msra.mxu1 %v1786_v30  ;;  %v1785_v36 = vld [vmem:[#allocation2] sm:$0xff]   ;;  %v1791_v37 = vld [vmem:[%s2345_s4 + $0x10] sm:$0xff]   ;;  %v1792_v4 = vld [vmem:[%s2345_s4 + $0x8] sm:$0xff]   ;;  %v2126_v58 = vand.u32 127, %v1143_v57 }
 0x1f3   : > { %1708 = vmatprep.subr.bf16.mxu1 %v1787_v31  ;;  %v1793_v5 = vld [vmem:[%s2345_s4] sm:$0xff]  }
 0x1f4   : > { %1677 = vmatpush3.bf16.msra.mxu0 %v1779_v28  ;;  %v1470_v59 = vld [vmem:[%s2346_s5] ss:$0 sm:$0xff]  ;;  %vm1145_vm0 = vcmp.lt.s32.totalorder %v2126_v58, 4 }
 0x1f5   : > { %1678 = vmatprep.subr.bf16.mxu0 %v1780_v17 }
 0x1f6   : > { %1709 = vmatpush3.bf16.msra.mxu1 %v1787_v31 }
 0x1f7   : > { %1710 = vmatprep.subr.bf16.mxu1 %v1788_v1 }
 0x1f8   : > { %1679 = vmatpush3.bf16.msra.mxu0 %v1780_v17 }
 0x1f9   : > { %1680 = vmatprep.subr.bf16.mxu0 %v1781_v29 }
 0x1fa   : > { %1711 = vmatpush3.bf16.msra.mxu1 %v1788_v1 }
 0x1fb   : > { %1712 = vmatprep.subr.bf16.mxu1 %v1789_v33 }
 0x1fc   : > { %1681 = vmatpush3.bf16.msra.mxu0 %v1781_v29 }
 0x1fd   : > { %1682 = vmatprep.subr.bf16.mxu0 %v1782_v0 }
 0x1fe   : > { %1713 = vmatpush3.bf16.msra.mxu1 %v1789_v33 }
 0x1ff   : > { %1714 = vmatprep.subr.bf16.mxu1 %v1790_v35 }
 0x200   : > { %1683 = vmatpush3.bf16.msra.mxu0 %v1782_v0 }
 0x201   : > { %1684 = vmatprep.subr.bf16.mxu0 %v1783_v32 }
 0x202   : > { %1715 = vmatpush3.bf16.msra.mxu1 %v1790_v35 }
 0x203   : > { %1716 = vmatprep.subr.bf16.mxu1 %v1791_v37 }
 0x204   : > { %1685 = vmatpush3.bf16.msra.mxu0 %v1783_v32 }
 0x205   : > { %1686 = vmatprep.subr.bf16.mxu0 %v1784_v34 }
 0x206   : > { %1717 = vmatpush3.bf16.msra.mxu1 %v1791_v37 }
 0x207   : > { %1718 = vmatprep.subr.bf16.mxu1 %v1792_v4 }
 0x208   : > { %1687 = vmatpush3.bf16.msra.mxu0 %v1784_v34 }
 0x209   : > { %1688 = vmatprep.subr.bf16.mxu0 %v1785_v36 }
 0x20a   : > { %1719 = vmatpush3.bf16.msra.mxu1 %v1792_v4 }
 0x20b   : > { %1720 = vmatprep.subr.bf16.mxu1 %v1793_v5 }
 0x20c   : > { %1689 = vmatpush3.bf16.msra.mxu0 %v1785_v36 }
 0x20e   : > { %1721 = vmatpush3.bf16.msra.mxu1 %v1793_v5 }
 0x20f   : > { %1691 = vmatmul.mubr.bf16.vlgmr.msra.gmra.mxu0 %v1455_v38 }
 0x210   : > { %1694 = vmatprep.mubr.bf16.mxu0 %v1456_v39 }
 0x217   : > { %1695 = vmatmul.mubr.bf16.gmra.mxu0 %v1457_v40 }
 0x218   : > { %1698 = vmatprep.mubr.bf16.mxu0 %v1458_v41 }
 0x21f   : > { %1699 = vmatmul.mubr.bf16.gmra.mxu0 %v1459_v42 }
 0x220   : > { %1702 = vmatprep.mubr.bf16.mxu0 %v1460_v2 }
 0x227   : > { %1703 = vmatmul.mubr.bf16.gmra.mxu0 %v1461_v3 }
 0x2cf   : > { %v1692_v6 = vpop.f32.mrf.mxu0 }
 0x2d1   : > { %v904_v7 = vpop.f32.mrf.mxu0 }
 0x2d3   : > { %v1693_v8 = vpop.f32.mrf.mxu0 }
 0x2d4   : > { %v968_v11 = vpack.c.bf16 %v1693_v8, %v1692_v6 }
 0x2d5   : > { %v907_v9 = vpop.f32.mrf.mxu0 }
 0x2d6   : > { %v967_v10 = vpack.c.bf16 %v907_v9, %v904_v7 }
 0x2d7   : > { %v1696_v12 = vpop.f32.mrf.mxu0 }
 0x2d8   : > { %1722 = vmatprep.mubr.bf16.mxu1 %v967_v10 }
 0x2d9   : > { %v920_v13 = vpop.f32.mrf.mxu0  ;;  %1723 = vmatmul.mubr.bf16.vlgmr.msra.gmra.mxu1 %v968_v11 }
 0x2db   : > { %v1697_v14 = vpop.f32.mrf.mxu0 }
 0x2dc   : > { %v970_v44 = vpack.c.bf16 %v1697_v14, %v1696_v12 }
 0x2dd   : > { %v923_v15 = vpop.f32.mrf.mxu0 }
 0x2de   : > { %v969_v43 = vpack.c.bf16 %v923_v15, %v920_v13 }
 0x2df   : > { %v1700_v45 = vpop.f32.mrf.mxu0 }
 0x2e0   : > { %1726 = vmatprep.mubr.bf16.mxu1 %v969_v43 }
 0x2e1   : > { %v936_v46 = vpop.f32.mrf.mxu0  ;;  %1727 = vmatmul.mubr.bf16.gmra.mxu1 %v970_v44 }
 0x2e3   : > { %v1701_v47 = vpop.f32.mrf.mxu0 }
 0x2e4   : > { %v972_v50 = vpack.c.bf16 %v1701_v47, %v1700_v45 }
 0x2e5   : > { %v939_v48 = vpop.f32.mrf.mxu0 }
 0x2e6   : > { %v971_v49 = vpack.c.bf16 %v939_v48, %v936_v46 }
 0x2e7   : > { %v1704_v51 = vpop.f32.mrf.mxu0 }
 0x2e8   : > { %1730 = vmatprep.mubr.bf16.mxu1 %v971_v49 }
 0x2e9   : > { %v952_v52 = vpop.f32.mrf.mxu0  ;;  %1731 = vmatmul.mubr.bf16.gmra.mxu1 %v972_v50 }
 0x2eb   : > { %v1705_v53 = vpop.f32.mrf.mxu0 }
 0x2ec   : > { %v974_v56 = vpack.c.bf16 %v1705_v53, %v1704_v51 }
 0x2ed   : > { %v955_v54 = vpop.f32.mrf.mxu0 }
 0x2ee   : > { %v973_v55 = vpack.c.bf16 %v955_v54, %v952_v52 }
 0x2f0   : > { %1734 = vmatprep.mubr.bf16.mxu1 %v973_v55 }
 0x2f1   : > { %1735 = vmatmul.mubr.bf16.gmra.mxu1 %v974_v56 }
 0x399   : > { %v1724_v60 = vpop.f32.mrf.mxu1 }
 0x39a   : > { %v1089_v61 = vadd.f32 %v1724_v60, %v1470_v59 }
 0x39b   : > { %v1080_v62 = vpop.f32.mrf.mxu1 }
 0x39c   : > { %v1081_v63 = vadd.f32 %v1470_v59, %v1080_v62  ;;  %v1148_v16 = vsel %vm1145_vm0, %v1089_v61, -inf }
 0x39d   : > { %1166 = vmax.xlane.f32.xlu1 %v1148_v16  ;;  %v1725_v18 = vpop.f32.mrf.mxu1 }
 0x39e   : > { %v1092_v19 = vadd.f32 %v1725_v18, %v1470_v59  ;;  %v1146_v20 = vsel %vm1145_vm0, %v1081_v63, -inf }
 0x39f   : > { %v1083_v21 = vpop.f32.mrf.mxu1  ;;  %1162 = vmax.xlane.f32.xlu0 %v1146_v20 }
 0x3a0   : > { %v1084_v22 = vadd.f32 %v1470_v59, %v1083_v21  ;;  %v1149_v23 = vsel %vm1145_vm0, %v1092_v19, -inf }
 0x3a1   : > { %1168 = vmax.xlane.f32.xlu1 %v1149_v23  ;;  %v1728_v24 = vpop.f32.mrf.mxu1 }
 0x3a2   : > { %v1105_v25 = vadd.f32 %v1728_v24, %v1470_v59  ;;  %v1147_v26 = vsel %vm1145_vm0, %v1084_v22, -inf }
 0x3a3   : > { %1164 = vmax.xlane.f32.xlu0 %v1147_v26  ;;  %v1096_v27 = vpop.f32.mrf.mxu1 }
 0x3a4   : > { %v1097_v17 = vadd.f32 %v1470_v59, %v1096_v27  ;;  %v1152_v30 = vsel %vm1145_vm0, %v1105_v25, -inf }
 0x3a5   : > { %v1729_v28 = vpop.f32.mrf.mxu1 }
 0x3a6   : > { %v1108_v29 = vadd.f32 %v1729_v28, %v1470_v59  ;;  %v1150_v34 = vsel %vm1145_vm0, %v1097_v17, -inf }
 0x3a7   : > { %1174 = vmax.xlane.f32.xlu0 %v1152_v30  ;;  %v1099_v31 = vpop.f32.mrf.mxu1 }
 0x3a8   : > { %v1100_v0 = vadd.f32 %v1470_v59, %v1099_v31  ;;  %v1153_v1 = vsel %vm1145_vm0, %v1108_v29, -inf }
 0x3a9   : > { %1176 = vmax.xlane.f32.xlu1 %v1153_v1  ;;  %v1732_v32 = vpop.f32.mrf.mxu1 }
 0x3aa   : > { %v1121_v33 = vadd.f32 %v1732_v32, %v1470_v59  ;;  %v1151_v36 = vsel %vm1145_vm0, %v1100_v0, -inf }
 0x3ab   : > { %1170 = vmax.xlane.f32.xlu0 %v1150_v34  ;;  %v1112_v35 = vpop.f32.mrf.mxu1 }
 0x3ac   : > { %v1113_v38 = vadd.f32 %v1470_v59, %v1112_v35  ;;  %v1156_v40 = vsel %vm1145_vm0, %v1121_v33, -inf }
 0x3ad   : > { %1172 = vmax.xlane.f32.xlu1 %v1151_v36  ;;  %v1733_v37 = vpop.f32.mrf.mxu1 }
 0x3ae   : > { %v1124_v39 = vadd.f32 %v1733_v37, %v1470_v59  ;;  %v2154_v4 = vsel %vm1145_vm0, %v1113_v38, -inf }
 0x3af   : > { %1182 = vmax.xlane.f32.xlu0 %v1156_v40  ;;  %v1115_v41 = vpop.f32.mrf.mxu1 }
 0x3b0   : > { %v1116_v42 = vadd.f32 %v1470_v59, %v1115_v41  ;;  %v1157_v2 = vsel %vm1145_vm0, %v1124_v39, -inf }
 0x3b1   : > { %1184 = vmax.xlane.f32.xlu1 %v1157_v2  ;;  %v1736_v3 = vpop.f32.mrf.mxu1 }
 0x3b2   : > { %v2159_v7 = vsel %vm1145_vm0, %v1116_v42, -inf  ;;  %v1137_v9 = vadd.f32 %v1736_v3, %v1470_v59 }
 0x3b3   : > { %1178 = vmax.xlane.f32.xlu0 %v2154_v4  ;;  %v1128_v5 = vpop.f32.mrf.mxu1 }
 0x3b4   : > { %v1129_v6 = vadd.f32 %v1470_v59, %v1128_v5  ;;  %v2173_v15 = vsel %vm1145_vm0, %v1137_v9, -inf }
 0x3b5   : > { %1180 = vmax.xlane.f32.xlu1 %v2159_v7  ;;  %v1737_v8 = vpop.f32.mrf.mxu1 }
 0x3b6   : > { %v2164_v10 = vsel %vm1145_vm0, %v1129_v6, -inf  ;;  %v1140_v13 = vadd.f32 %v1737_v8, %v1470_v59 }
 0x3b7   : > { %v1131_v11 = vpop.f32.mrf.mxu1  ;;  %1186 = vmax.xlane.f32.xlu0 %v2164_v10 }
 0x3b8   : > { %v1132_v12 = vadd.f32 %v1470_v59, %v1131_v11  ;;  %v2179_v43 = vsel %vm1145_vm0, %v1140_v13, -inf }
 0x3ba   : > { %v2169_v14 = vsel %vm1145_vm0, %v1132_v12, -inf }
 0x3bb   : > { %1188 = vmax.xlane.f32.xlu1 %v2169_v14  ;;  %1190 = vmax.xlane.f32.xlu0 %v2173_v15 }
 0x3bf   : > { %1192 = vmax.xlane.f32.xlu1 %v2179_v43 }
 0x426   : > { %v1167_v44 = vpop.xlane.xlu1 %1166 }
 0x427   : > { %v2182_v45 = vsub.f32 %v1148_v16, %v1167_v44 }
 0x428   : > { %v1163_v46 = vpop.xlane.xlu0 %1162 }
 0x429   : > { %v1214_v47 = vmul.f32 1.442695, %v2182_v45  ;;  %v2185_v48 = vsub.f32 %v1146_v20, %v1163_v46 }
 0x42a   : > { %v1169_v49 = vpop.xlane.xlu1 %1168 }
 0x42b   : > { %1794 = vpow2.f32 %v1214_v47  ;;  %v1210_v50 = vmul.f32 1.442695, %v2185_v48  ;;  %v2188_v51 = vsub.f32 %v1149_v23, %v1169_v49 }
 0x42c   : > { %v1165_v52 = vpop.xlane.xlu0 %1164 }
 0x42d   : > { %v1216_v53 = vmul.f32 1.442695, %v2188_v51  ;;  %v2191_v54 = vsub.f32 %v1147_v26, %v1165_v52  ;;  %1796 = vpow2.f32 %v1210_v50 }
 0x42f   : > { %1798 = vpow2.f32 %v1216_v53  ;;  %v1212_v55 = vmul.f32 1.442695, %v2191_v54 }
 0x430   : > { %v1175_v56 = vpop.xlane.xlu0 %1174 }
 0x431   : > { %v2194_v57 = vsub.f32 %v1152_v30, %v1175_v56  ;;  %1800 = vpow2.f32 %v1212_v55 }
 0x432   : > { %v1177_v59 = vpop.xlane.xlu1 %1176 }
 0x433   : > { %v1222_v60 = vmul.f32 1.442695, %v2194_v57  ;;  %v2197_v61 = vsub.f32 %v1153_v1, %v1177_v59 }
 0x434   : > { %v1171_v62 = vpop.xlane.xlu0 %1170 }
 0x435   : > { %1802 = vpow2.f32 %v1222_v60  ;;  %v1224_v63 = vmul.f32 1.442695, %v2197_v61  ;;  %v2200_v16 = vsub.f32 %v1150_v34, %v1171_v62 }
 0x436   : > { %v1173_v18 = vpop.xlane.xlu1 %1172 }
 0x437   : > { %1804 = vpow2.f32 %v1224_v63  ;;  %v1218_v19 = vmul.f32 1.442695, %v2200_v16  ;;  %v2203_v20 = vsub.f32 %v1151_v36, %v1173_v18 }
 0x438   : > { %v1795_v21 = vpop.eup %1794  ;;  %v1183_v22 = vpop.xlane.xlu0 %1182 }
 0x439   : > { %1806 = vpow2.f32 %v1218_v19  ;;  %v1220_v23 = vmul.f32 1.442695, %v2203_v20  ;;  %v2206_v24 = vsub.f32 %v1156_v40, %v1183_v22  ;;  %1246 = vadd.xlane.f32.xlu0 %v1795_v21 }
 0x43a   : > { %v1185_v25 = vpop.xlane.xlu1 %1184  ;;  %v1797_v26 = vpop.eup %1796 }
 0x43b   : > { %1808 = vpow2.f32 %v1220_v23  ;;  %v1230_v27 = vmul.f32 1.442695, %v2206_v24  ;;  %v2209_v28 = vsub.f32 %v1157_v2, %v1185_v25 }
 0x43c   : > { %v1799_v17 = vpop.eup %1798  ;;  %v1179_v29 = vpop.xlane.xlu0 %1178 }
 0x43d   : > { %1810 = vpow2.f32 %v1230_v27  ;;  %v1232_v30 = vmul.f32 1.442695, %v2209_v28  ;;  %v2213_v31 = vsub.f32 %v2154_v4, %v1179_v29  ;;  %1248 = vadd.xlane.f32.xlu1 %v1799_v17  ;;  %1242 = vadd.xlane.f32.xlu0 %v1797_v26 }
 0x43e   : > { %v1181_v0 = vpop.xlane.xlu1 %1180  ;;  %v1801_v33 = vpop.eup %1800 }
 0x43f   : > { %1812 = vpow2.f32 %v1232_v30  ;;  %v1226_v1 = vmul.f32 1.442695, %v2213_v31  ;;  %v2217_v32 = vsub.f32 %v2159_v7, %v1181_v0 }
 0x440   : > { %v1187_v34 = vpop.xlane.xlu0 %1186 }
 0x441   : > { %1814 = vpow2.f32 %v1226_v1  ;;  %v1228_v35 = vmul.f32 1.442695, %v2217_v32  ;;  %v2221_v36 = vsub.f32 %v2164_v10, %v1187_v34  ;;  %1244 = vadd.xlane.f32.xlu1 %v1801_v33 }
 0x442   : > { %v1803_v37 = vpop.eup %1802 }
 0x443   : > { %1816 = vpow2.f32 %v1228_v35  ;;  %v1234_v38 = vmul.f32 1.442695, %v2221_v36  ;;  %1254 = vadd.xlane.f32.xlu0 %v1803_v37 }
 0x444   : > { %v1805_v39 = vpop.eup %1804  ;;  %v1189_v40 = vpop.xlane.xlu1 %1188 }
 0x445   : > { %v1191_v41 = vpop.xlane.xlu0 %1190  ;;  %1818 = vpow2.f32 %v1234_v38  ;;  %v2225_v42 = vsub.f32 %v2169_v14, %v1189_v40  ;;  %1256 = vadd.xlane.f32.xlu1 %v1805_v39 }
 0x446   : > { %v2228_v2 = vsub.f32 %v2173_v15, %v1191_v41  ;;  %v1807_v3 = vpop.eup %1806 }
 0x447   : > { %v1236_v4 = vmul.f32 1.442695, %v2225_v42  ;;  %1250 = vadd.xlane.f32.xlu0 %v1807_v3 }
 0x448   : > { %v1238_v5 = vmul.f32 1.442695, %v2228_v2  ;;  %v1809_v6 = vpop.eup %1808  ;;  %v1193_v7 = vpop.xlane.xlu1 %1192 }
 0x449   : > { %1820 = vpow2.f32 %v1236_v4  ;;  %v2233_v8 = vsub.f32 %v2179_v43, %v1193_v7  ;;  %1252 = vadd.xlane.f32.xlu1 %v1809_v6 }
 0x44a   : > { %v1811_v9 = vpop.eup %1810  ;;  %1822 = vpow2.f32 %v1238_v5 }
 0x44b   : > { %v1240_v10 = vmul.f32 1.442695, %v2233_v8  ;;  %1262 = vadd.xlane.f32.xlu0 %v1811_v9 }
 0x44c   : > { %v1813_v11 = vpop.eup %1812 }
 0x44d   : > { %1824 = vpow2.f32 %v1240_v10  ;;  %1264 = vadd.xlane.f32.xlu1 %v1813_v11 }
 0x44e   : > { %v1815_v12 = vpop.eup %1814 }
 0x44f   : > { %1258 = vadd.xlane.f32.xlu0 %v1815_v12 }
 0x450   : > { %v1817_v13 = vpop.eup %1816 }
 0x451   : > { %1260 = vadd.xlane.f32.xlu1 %v1817_v13 }
 0x452   : > { %v1819_v14 = vpop.eup %1818 }
 0x453   : > { %1266 = vadd.xlane.f32.xlu0 %v1819_v14 }
 0x456   : > { %v1821_v15 = vpop.eup %1820 }
 0x457   : > { %v1823_v44 = vpop.eup %1822  ;;  %1268 = vadd.xlane.f32.xlu1 %v1821_v15 }
 0x458   : > { %1270 = vadd.xlane.f32.xlu0 %v1823_v44 }
 0x45a   : > { %v1825_v43 = vpop.eup %1824 }
 0x45b   : > { %1272 = vadd.xlane.f32.xlu1 %v1825_v43 }
 0x4c2   : > { %v1247_v46 = vpop.xlane.xlu0 %1246 }
 0x4c3   : > { %1826 = vlog2.f32 %v1247_v46 }
 0x4c6   : > { %v1249_v47 = vpop.xlane.xlu1 %1248  ;;  %v1243_v49 = vpop.xlane.xlu0 %1242 }
 0x4c7   : > { %1828 = vlog2.f32 %v1249_v47 }
 0x4c8   : > { %1830 = vlog2.f32 %v1243_v49 }
 0x4ca   : > { %v1245_v50 = vpop.xlane.xlu1 %1244 }
 0x4cb   : > { %1832 = vlog2.f32 %v1245_v50 }
 0x4cc   : > { %v1255_v52 = vpop.xlane.xlu0 %1254 }
 0x4cd   : > { %1834 = vlog2.f32 %v1255_v52 }
 0x4ce   : > { %v1257_v53 = vpop.xlane.xlu1 %1256 }
 0x4cf   : > { %1836 = vlog2.f32 %v1257_v53 }
 0x4d0   : > { %v1827_v55 = vpop.eup %1826  ;;  %v1251_v56 = vpop.xlane.xlu0 %1250 }
 0x4d1   : > { %v1279_v59 = vmul.f32 0.6931472, %v1827_v55  ;;  %1838 = vlog2.f32 %v1251_v56 }
 0x4d2   : > { %v1253_v60 = vpop.xlane.xlu1 %1252 }
 0x4d3   : > { %v1308_v62 = vsub.f32 %v2182_v45, %v1279_v59  ;;  %1840 = vlog2.f32 %v1253_v60 }
 0x4d4   : > { %v1829_v63 = vpop.eup %1828  ;;  %v1263_v18 = vpop.xlane.xlu0 %1262 }
 0x4d5   : > { %v1831_v19 = vpop.eup %1830  ;;  %v1324_v21 = vsel %vm1145_vm0, %v1308_v62, 0.0  ;;  %v1281_v22 = vmul.f32 0.6931472, %v1829_v63  ;;  %1842 = vlog2.f32 %v1263_v18 }
 0x4d6   : > { %1340 = vst [vmem:[%s2347_s6 + $0x10] sm:$0xff] %v1324_v21  ;;  %v1275_v23 = vmul.f32 0.6931472, %v1831_v19  ;;  %v1265_v25 = vpop.xlane.xlu1 %1264 }
 0x4d7   : > { %v1309_v26 = vsub.f32 %v2188_v51, %v1281_v22  ;;  %1844 = vlog2.f32 %v1265_v25 }
 0x4d8   : > { %v1833_v27 = vpop.eup %1832  ;;  %v1306_v45 = vsub.f32 %v2185_v48, %v1275_v23  ;;  %v1259_v17 = vpop.xlane.xlu0 %1258 }
 0x4d9   : > { %v1325_v29 = vsel %vm1145_vm0, %v1309_v26, 0.0  ;;  %v1277_v30 = vmul.f32 0.6931472, %v1833_v27  ;;  %1846 = vlog2.f32 %v1259_v17 }
 0x4da   : > { %v1835_v0 = vpop.eup %1834  ;;  %1341 = vst [vmem:[%s2347_s6 + $0x18] sm:$0xff] %v1325_v29  ;;  %v1322_v1 = vsel %vm1145_vm0, %v1306_v45, 0.0  ;;  %v1261_v33 = vpop.xlane.xlu1 %1260 }
 0x4db   : > { %1338 = vst [vmem:[%s2347_s6] sm:$0xff] %v1322_v1  ;;  %v1307_v48 = vsub.f32 %v2191_v54, %v1277_v30  ;;  %v1287_v51 = vmul.f32 0.6931472, %v1835_v0  ;;  %1848 = vlog2.f32 %v1261_v33 }
 0x4dc   : > { %v1837_v34 = vpop.eup %1836  ;;  %v1267_v35 = vpop.xlane.xlu0 %1266 }
 0x4dd   : > { %v1323_v37 = vsel %vm1145_vm0, %v1307_v48, 0.0  ;;  %v1312_v38 = vsub.f32 %v2194_v57, %v1287_v51  ;;  %v1289_v39 = vmul.f32 0.6931472, %v1837_v34  ;;  %1850 = vlog2.f32 %v1267_v35 }
 0x4de   : > { %v1839_v40 = vpop.eup %1838  ;;  %1339 = vst [vmem:[%s2347_s6 + $0x8] sm:$0xff] %v1323_v37 }
 0x4df   : > { %v1328_v41 = vsel %vm1145_vm0, %v1312_v38, 0.0  ;;  %v1313_v54 = vsub.f32 %v2197_v61, %v1289_v39  ;;  %v1283_v3 = vmul.f32 0.6931472, %v1839_v40 }
 0x4e0   : > { %v1841_v4 = vpop.eup %1840  ;;  %1344 = vst [vmem:[%s2347_s6 + $0x30] sm:$0xff] %v1328_v41  ;;  %v1269_v5 = vpop.xlane.xlu1 %1268 }
 0x4e1   : > { %v1329_v57 = vsel %vm1145_vm0, %v1313_v54, 0.0  ;;  %v1310_v6 = vsub.f32 %v2200_v16, %v1283_v3  ;;  %v1285_v7 = vmul.f32 0.6931472, %v1841_v4  ;;  %1852 = vlog2.f32 %v1269_v5  ;;  %v1271_v9 = vpop.xlane.xlu0 %1270 }
 0x4e2   : > { %v1843_v10 = vpop.eup %1842  ;;  %1345 = vst [vmem:[%s2347_s6 + $0x38] sm:$0xff] %v1329_v57  ;;  %1854 = vlog2.f32 %v1271_v9 }
 0x4e3   : > { %v1326_v61 = vsel %vm1145_vm0, %v1310_v6, 0.0  ;;  %v1311_v11 = vsub.f32 %v2203_v20, %v1285_v7  ;;  %v1295_v12 = vmul.f32 0.6931472, %v1843_v10 }
 0x4e4   : > { %v1845_v13 = vpop.eup %1844  ;;  %1342 = vst [vmem:[%s2347_s6 + $0x20] sm:$0xff] %v1326_v61  ;;  %v1273_v16 = vpop.xlane.xlu1 %1272 }
 0x4e5   : > { %v1327_v14 = vsel %vm1145_vm0, %v1311_v11, 0.0  ;;  %v1316_v15 = vsub.f32 %v2206_v24, %v1295_v12  ;;  %v1297_v44 = vmul.f32 0.6931472, %v1845_v13  ;;  %1856 = vlog2.f32 %v1273_v16 }
 0x4e6   : > { %v1847_v43 = vpop.eup %1846  ;;  %1343 = vst [vmem:[%s2347_s6 + $0x28] sm:$0xff] %v1327_v14 }
 0x4e7   : > { %v1332_v20 = vsel %vm1145_vm0, %v1316_v15, 0.0  ;;  %v1317_v46 = vsub.f32 %v2209_v28, %v1297_v44  ;;  %v1291_v47 = vmul.f32 0.6931472, %v1847_v43 }
 0x4e8   : > { %v1849_v49 = vpop.eup %1848  ;;  %1348 = vst [vmem:[%s2347_s6 + $0x50] sm:$0xff] %v1332_v20 }
 0x4e9   : > { %v1333_v24 = vsel %vm1145_vm0, %v1317_v46, 0.0  ;;  %v1314_v50 = vsub.f32 %v2213_v31, %v1291_v47  ;;  %v1293_v52 = vmul.f32 0.6931472, %v1849_v49 }
 0x4ea   : > { %v1851_v53 = vpop.eup %1850  ;;  %1349 = vst [vmem:[%s2347_s6 + $0x58] sm:$0xff] %v1333_v24 }
 0x4eb   : > { %v1330_v28 = vsel %vm1145_vm0, %v1314_v50, 0.0  ;;  %v1315_v55 = vsub.f32 %v2217_v32, %v1293_v52  ;;  %v1299_v56 = vmul.f32 0.6931472, %v1851_v53 }
 0x4ec   : > { %1346 = vst [vmem:[%s2347_s6 + $0x40] sm:$0xff] %v1330_v28 }
 0x4ed   : > { %v1331_v59 = vsel %vm1145_vm0, %v1315_v55, 0.0  ;;  %v1318_v31 = vsub.f32 %v2221_v36, %v1299_v56 }
 0x4ee   : > { %v1853_v60 = vpop.eup %1852  ;;  %1347 = vst [vmem:[%s2347_s6 + $0x48] sm:$0xff] %v1331_v59 }
 0x4ef   : > { %v1855_v62 = vpop.eup %1854  ;;  %v1334_v63 = vsel %vm1145_vm0, %v1318_v31, 0.0  ;;  %v1301_v32 = vmul.f32 0.6931472, %v1853_v60 }
 0x4f0   : > { %1350 = vst [vmem:[%s2347_s6 + $0x60] sm:$0xff] %v1334_v63  ;;  %v1303_v18 = vmul.f32 0.6931472, %v1855_v62 }
 0x4f1   : > { %v1319_v19 = vsub.f32 %v2225_v42, %v1301_v32 }
 0x4f2   : > { %v1857_v21 = vpop.eup %1856  ;;  %v1320_v36 = vsub.f32 %v2228_v2, %v1303_v18 }
 0x4f3   : > { %v1335_v22 = vsel %vm1145_vm0, %v1319_v19, 0.0  ;;  %v1305_v23 = vmul.f32 0.6931472, %v1857_v21 }
 0x4f4   : > { %1351 = vst [vmem:[%s2347_s6 + $0x68] sm:$0xff] %v1335_v22  ;;  %v1336_v25 = vsel %vm1145_vm0, %v1320_v36, 0.0 }
 0x4f5   : > { %1352 = vst [vmem:[%s2347_s6 + $0x70] sm:$0xff] %v1336_v25  ;;  %v1321_v42 = vsub.f32 %v2233_v8, %v1305_v23 }
 0x4f7   : > { %v1337_v2 = vsel %vm1145_vm0, %v1321_v42, 0.0 }
 0x4f8   : > { %1353 = vst [vmem:[%s2347_s6 + $0x78] sm:$0xff] %v1337_v2 }
 0x4f9 PF: > { %s16_s23 = sadd.s32 1, %s1880_s23   ;;  %s2348_s21 = smov %s1876_s22 }
 0x4fa   : > { %p13_p6 = scmp.ge.s32.totalorder %s16_s23, 4   ;;  %s2349_s22 = smov %s2351_s24 }
 0x4fc   :  { %15 = sbr.rel (!%p13_p6) target bundleno = 2 (0x2), region = 81 }

</bundles_post_ra>
